<compile_context>
chip_gen: v7x
topology: tpu7x:2x2x1
jax: 0.10.0
libtpu: 0.0.40
codegen_flags: <defaults>
</compile_context>

<pallas_src>
import jax
import jax.numpy as jnp
from jax.experimental import pallas as pl
from jax.experimental.pallas import tpu as pltpu


def adapter_kernel(mix_ref, x_ref, w1_ref, b1_ref, w2_ref, b2_ref, o_ref):
    """One (ts, D) slab of rows, all belonging to batch b = program_id(0).

    y = w0 * (relu(x @ W1 + b1) @ W2 + b2) + (w0 + w1) * x
    (the `adapter(x) + x` residual is folded into the x coefficient).
    """
    b = pl.program_id(0)
    w0 = mix_ref[b, 0]                       # per-batch SMEM scalar
    wr = w0 + mix_ref[b, 1]                  # w0*(mlp+x) + w1*x -> (w0+w1) on x

    x = x_ref[...]                           # (ts, D) f32
    xb = x.astype(jnp.bfloat16)              # bf16 MXU operand, f32 accumulate
    down = jnp.dot(xb, w1_ref[...], preferred_element_type=jnp.float32) + b1_ref[...]
    down = jnp.maximum(down, 0.0)            # hidden_act == 'relu' (f32)
    up = jnp.dot(down.astype(jnp.bfloat16), w2_ref[...],
                 preferred_element_type=jnp.float32) + b2_ref[...]
    o_ref[...] = (w0 * up + wr * x).astype(o_ref.dtype)


def _chip_vmem_budget_bytes():
    """~80% of the physical per-core VMEM (v5e/v6e: 128 MiB, v7x: 64 MiB)."""
    try:
        cap = int(pltpu.get_tpu_info().vmem_capacity_bytes)
    except Exception:
        cap = 64 << 20                       # conservative (v7x-sized) fallback
    return int(0.8 * cap)


def _plan_tiles(B, S, D, Hp):
    """Pick the seq-row tile, grid and vmem limit from the chip's VMEM budget."""
    f32, bf16 = 4, 2
    budget = _chip_vmem_budget_bytes()

    # Grid-invariant single-copy residents: W1/W2 (bf16) + b1/b2 (f32).
    resident = 2 * D * Hp * bf16 + (Hp + D) * f32

    # Per-row bytes of one tile: double-buffered x-in and y-out plus in-kernel temporaries
    # (xb bf16, down f32 + bf16, up f32).
    per_row = (2 * 2 * D * f32
               + D * bf16
               + Hp * (f32 + bf16)
               + D * f32)

    headroom = 4 << 20                       # compiler-internal scratch
    avail = budget - resident - headroom
    max_rows = max(8, int(avail // int(1.5 * per_row)))   # 1.5x slop for layout copies
    ts = min(S, 1024, max_rows)
    if ts < S:
        ts = max(8, (ts // 8) * 8)           # partial tiling: rows must be a sublane multiple

    # Guarantee >=2 grid steps so both v7x TensorCores get work (when the shape allows).
    if B * ((S + ts - 1) // ts) < 2 and S >= 16:
        ts = max(8, ((S // 2 + 7) // 8) * 8)

    grid = (B, (S + ts - 1) // ts)
    need = resident + int(1.5 * per_row * ts) + headroom
    vmem_limit = int(min(max(need, 32 << 20), budget))
    return ts, grid, vmem_limit


def _switch_mix_weights(gumbel_key, batch, switch_logits, switch_temp):
    """Gumbel(0,1) sample (B, 2) + softmax over the 2 switch classes (tiny; JAX glue)."""
    u = jax.random.uniform(gumbel_key, (batch, 2), dtype=jnp.float32,
                           minval=1e-6, maxval=1.0 - 1e-6)
    g = -jnp.log(-jnp.log(u))
    return jax.nn.softmax((g + switch_logits[None, :]) / switch_temp, axis=1)


def adapter_forward(x, params, switch_logits, switch_temp, gumbel_key):
    """Adapter.forward with adapter_switch=True (training path). x: (B, S, D) float32."""
    B, S, D = x.shape
    H = params["w1"].shape[1]
    Hp = ((H + 127) // 128) * 128            # lane-dense hidden dim (zero pad -> same math)

    mix = _switch_mix_weights(gumbel_key, B, switch_logits, switch_temp)   # (B, 2) f32

    # Zero-padded bf16 matmul weights (single VMEM copy for the whole grid); f32 biases.
    w1 = jnp.zeros((D, Hp), jnp.bfloat16).at[:, :H].set(params["w1"].astype(jnp.bfloat16))
    b1 = jnp.zeros((1, Hp), jnp.float32).at[:, :H].set(params["b1"].astype(jnp.float32))
    w2 = jnp.zeros((Hp, D), jnp.bfloat16).at[:H, :].set(params["w2"].astype(jnp.bfloat16))
    b2 = params["b2"].astype(jnp.float32)

    ts, grid, vmem_limit = _plan_tiles(B, S, D, Hp)

    def _resident_vmem():
        # Whole array resident in VMEM for the whole grid: no re-fetch, no double-buffering.
        return pl.BlockSpec(memory_space=pltpu.MemorySpace.VMEM)

    grid_spec = pltpu.PrefetchScalarGridSpec(
        num_scalar_prefetch=1,               # mix (B, 2) -> SMEM, read as per-batch scalars
        grid=grid,
        in_specs=[
            pl.BlockSpec((pl.Squeezed(), ts, D), lambda b, i, mix: (b, i, 0)),   # x rows
            _resident_vmem(),                # W1 (D, Hp) bf16
            _resident_vmem(),                # b1 (1, Hp) f32
            _resident_vmem(),                # W2 (Hp, D) bf16
            _resident_vmem(),                # b2 (1, D)  f32
        ],
        out_specs=pl.BlockSpec((pl.Squeezed(), ts, D), lambda b, i, mix: (b, i, 0)),
    )

    y = pl.pallas_call(
        adapter_kernel,
        out_shape=jax.ShapeDtypeStruct((B, S, D), x.dtype),
        grid_spec=grid_spec,
        compiler_params=pltpu.CompilerParams(
            dimension_semantics=("parallel", "parallel"),
            vmem_limit_bytes=vmem_limit,
        ),
    )(mix, x, w1, b1, w2, b2)

    return y


def make_params(key, D, downsample_factor=4, std=0.001):
    """Adapter.init_weights: normal(std=0.001) clamped to +/- 2*std for weights and biases."""
    H = D // downsample_factor
    k1, k2, k3, k4 = jax.random.split(key, 4)

    def clipped_normal(k, shape):
        return jnp.clip(std * jax.random.normal(k, shape, dtype=jnp.float32),
                        -2.0 * std, 2.0 * std)

    return {
        "w1": clipped_normal(k1, (D, H)),
        "b1": clipped_normal(k2, (1, H)),
        "w2": clipped_normal(k3, (H, D)),
        "b2": clipped_normal(k4, (1, D)),
    }


def adapter_reference(x, params, mix):
    """Pure-JAX f32 reference of Adapter.forward (adapter_switch path)."""
    down = jnp.maximum(jnp.einsum("bsd,dh->bsh", x, params["w1"]) + params["b1"][0], 0.0)
    up = jnp.einsum("bsh,hd->bsd", down, params["w2"]) + params["b2"][0]
    output = up + x
    return mix[:, 0][:, None, None] * output + mix[:, 1][:, None, None] * x


if __name__ == "__main__":
    B, S, D = 2, 8, 32
    key = jax.random.PRNGKey(0)
    k_x, k_p, k_g = jax.random.split(key, 3)

    x = jax.random.normal(k_x, (B, S, D), dtype=jnp.float32)
    params = make_params(k_p, D, downsample_factor=4)

    switch_logits = jnp.array([0.5, 0.5], dtype=jnp.float32)   # initial_logits
    switch_temp = jnp.float32(1.0)                             # switch_temp

    y = adapter_forward(x, params, switch_logits, switch_temp, k_g)
    y = jax.block_until_ready(y)

    # Sanity check against a pure-JAX f32 reference (bf16 matmul operands -> loose tol).
    mix = _switch_mix_weights(k_g, B, switch_logits, switch_temp)
    ref = adapter_reference(x, params, mix)

    assert y.shape == (B, S, D) and y.dtype == jnp.float32
    assert bool(jnp.all(jnp.isfinite(y)))
    assert bool(jnp.allclose(y, ref, atol=1e-2, rtol=1e-2))
    print("KERNEL_OK")
</pallas_src>

<mosaic_0001>
module attributes {stable_mosaic.version = 11 : i64} {
  func.func @adapter_kernel(%arg0: i32, %arg1: i32, %arg2: memref<2x2xf32, #tpu.memory_space<smem>>, %arg3: memref<1x8x32xf32, #tpu.memory_space<vmem>>, %arg4: memref<32x128xbf16, #tpu.memory_space<vmem>>, %arg5: memref<1x128xf32, #tpu.memory_space<vmem>>, %arg6: memref<128x32xbf16, #tpu.memory_space<vmem>>, %arg7: memref<1x32xf32, #tpu.memory_space<vmem>>, %arg8: memref<1x8x32xf32, #tpu.memory_space<vmem>>) attributes {dimension_semantics = [#tpu.dimension_semantics<parallel>, #tpu.dimension_semantics<parallel>], iteration_bounds = array<i64: 2, 1>, scalar_prefetch = 1 : i64, scratch_operands = 0 : i64, tpu.core_type = #tpu.core_type<tc>, window_params = [{transform_indices = @transform_0, window_bounds = array<i64: 1, 8, 32>}, {pipeline_mode = #tpu.pipeline_mode<synchronous>, transform_indices = @transform_1, window_bounds = array<i64: 32, 128>}, {pipeline_mode = #tpu.pipeline_mode<synchronous>, transform_indices = @transform_2, window_bounds = array<i64: 1, 128>}, {pipeline_mode = #tpu.pipeline_mode<synchronous>, transform_indices = @transform_3, window_bounds = array<i64: 128, 32>}, {pipeline_mode = #tpu.pipeline_mode<synchronous>, transform_indices = @transform_4, window_bounds = array<i64: 1, 32>}, {transform_indices = @transform_5, window_bounds = array<i64: 1, 8, 32>}]} {
    %0 = arith.index_cast %arg0 : i32 to index
    %c0 = arith.constant 0 : index
    %1 = memref.load %arg2[%0, %c0] : memref<2x2xf32, #tpu.memory_space<smem>>
    %2 = arith.index_cast %arg0 : i32 to index
    %c1 = arith.constant 1 : index
    %3 = memref.load %arg2[%2, %c1] : memref<2x2xf32, #tpu.memory_space<smem>>
    %4 = arith.addf %1, %3 : f32
    %c0_0 = arith.constant 0 : index
    %c0_1 = arith.constant 0 : index
    %c0_2 = arith.constant 0 : index
    %5 = vector.load %arg3[%c0_0, %c0_1, %c0_2] : memref<1x8x32xf32, #tpu.memory_space<vmem>>, vector<1x8x32xf32>
    %6 = vector.shape_cast %5 : vector<1x8x32xf32> to vector<8x32xf32>
    %7 = arith.truncf %6 : vector<8x32xf32> to vector<8x32xbf16>
    %c0_3 = arith.constant 0 : index
    %c0_4 = arith.constant 0 : index
    %8 = vector.load %arg4[%c0_3, %c0_4] : memref<32x128xbf16, #tpu.memory_space<vmem>>, vector<32x128xbf16>
    %cst = arith.constant dense<0.000000e+00> : vector<8x128xf32>
    %9 = tpu.matmul %7, %8, %cst {dimension_numbers = #tpu.dot_dimension_numbers<[1], [0], [0], [1], [0, 0, 1, 1], [], []>} : vector<8x32xbf16>, vector<32x128xbf16>, vector<8x128xf32> -> vector<8x128xf32>
    %c0_5 = arith.constant 0 : index
    %c0_6 = arith.constant 0 : index
    %10 = vector.load %arg5[%c0_5, %c0_6] : memref<1x128xf32, #tpu.memory_space<vmem>>, vector<1x128xf32>
    %11 = vector.broadcast %10 : vector<1x128xf32> to vector<8x128xf32>
    %12 = arith.addf %9, %11 : vector<8x128xf32>
    %cst_7 = arith.constant 0.000000e+00 : f32
    %13 = vector.broadcast %cst_7 : f32 to vector<8x128xf32>
    %14 = arith.maximumf %12, %13 : vector<8x128xf32>
    %15 = arith.truncf %14 : vector<8x128xf32> to vector<8x128xbf16>
    %c0_8 = arith.constant 0 : index
    %c0_9 = arith.constant 0 : index
    %16 = vector.load %arg6[%c0_8, %c0_9] : memref<128x32xbf16, #tpu.memory_space<vmem>>, vector<128x32xbf16>
    %cst_10 = arith.constant dense<0.000000e+00> : vector<8x32xf32>
    %17 = tpu.matmul %15, %16, %cst_10 {dimension_numbers = #tpu.dot_dimension_numbers<[1], [0], [0], [1], [0, 0, 1, 1], [], []>} : vector<8x128xbf16>, vector<128x32xbf16>, vector<8x32xf32> -> vector<8x32xf32>
    %c0_11 = arith.constant 0 : index
    %c0_12 = arith.constant 0 : index
    %18 = vector.load %arg7[%c0_11, %c0_12] : memref<1x32xf32, #tpu.memory_space<vmem>>, vector<1x32xf32>
    %19 = vector.broadcast %18 : vector<1x32xf32> to vector<8x32xf32>
    %20 = arith.addf %17, %19 : vector<8x32xf32>
    %21 = vector.broadcast %1 : f32 to vector<8x32xf32>
    %22 = arith.mulf %21, %20 : vector<8x32xf32>
    %23 = vector.broadcast %4 : f32 to vector<8x32xf32>
    %24 = arith.mulf %23, %6 : vector<8x32xf32>
    %25 = arith.addf %22, %24 : vector<8x32xf32>
    %c0_13 = arith.constant 0 : index
    %c0_14 = arith.constant 0 : index
    %c0_15 = arith.constant 0 : index
    %26 = vector.load %arg8[%c0_13, %c0_14, %c0_15] : memref<1x8x32xf32, #tpu.memory_space<vmem>>, vector<1x8x32xf32>
    %27 = vector.shape_cast %26 : vector<1x8x32xf32> to vector<8x32xf32>
    %28 = vector.shape_cast %25 : vector<8x32xf32> to vector<1x8x32xf32>
    tpu.vector_store %arg8[%c0_13, %c0_14, %c0_15], %28 {strides = array<i32>} : memref<1x8x32xf32, #tpu.memory_space<vmem>>, vector<1x8x32xf32>,
    return
  }
  func.func @transform_0(%arg0: i32, %arg1: i32, %arg2: memref<2x2xf32, #tpu.memory_space<smem>>) -> (i32, i32, i32) {
    %c0_i32 = arith.constant 0 : i32
    %c0_i32_0 = arith.constant 0 : i32
    return %arg0, %arg1, %c0_i32 : i32, i32, i32
  }
  func.func @transform_1(%arg0: i32, %arg1: i32, %arg2: memref<2x2xf32, #tpu.memory_space<smem>>) -> (i32, i32) {
    %c0_i32 = arith.constant 0 : i32
    %c0_i32_0 = arith.constant 0 : i32
    %c0_i32_1 = arith.constant 0 : i32
    return %c0_i32, %c0_i32_0 : i32, i32
  }
  func.func @transform_2(%arg0: i32, %arg1: i32, %arg2: memref<2x2xf32, #tpu.memory_space<smem>>) -> (i32, i32) {
    %c0_i32 = arith.constant 0 : i32
    %c0_i32_0 = arith.constant 0 : i32
    %c0_i32_1 = arith.constant 0 : i32
    return %c0_i32, %c0_i32_0 : i32, i32
  }
  func.func @transform_3(%arg0: i32, %arg1: i32, %arg2: memref<2x2xf32, #tpu.memory_space<smem>>) -> (i32, i32) {
    %c0_i32 = arith.constant 0 : i32
    %c0_i32_0 = arith.constant 0 : i32
    %c0_i32_1 = arith.constant 0 : i32
    return %c0_i32, %c0_i32_0 : i32, i32
  }
  func.func @transform_4(%arg0: i32, %arg1: i32, %arg2: memref<2x2xf32, #tpu.memory_space<smem>>) -> (i32, i32) {
    %c0_i32 = arith.constant 0 : i32
    %c0_i32_0 = arith.constant 0 : i32
    %c0_i32_1 = arith.constant 0 : i32
    return %c0_i32, %c0_i32_0 : i32, i32
  }
  func.func @transform_5(%arg0: i32, %arg1: i32, %arg2: memref<2x2xf32, #tpu.memory_space<smem>>) -> (i32, i32, i32) {
    %c0_i32 = arith.constant 0 : i32
    %c0_i32_0 = arith.constant 0 : i32
    return %arg0, %arg1, %c0_i32 : i32, i32, i32
  }
}

</mosaic_0001>

<bundles_post_ra>
// kernel: tpu_custom_call.1
= control target key start
LH: loop header
LB: loop body
LE: loop exit
PB: predicated region body
PF: predicated region fallthrough
CT: control target
= control target key end

     0   :  { %s951_s0 = inlined_call_operand.vmem [shape: f32[2,2], index: 0, kind: input, shape index: {}]   ;;  %s952_s1 = inlined_call_operand.vmem [shape: f32[2,8,32], index: 1, kind: input, shape index: {}]   ;;  %s953_s2 = inlined_call_operand.vmem [shape: bf16[32,128], index: 2, kind: input, shape index: {}]   ;;  %s954_s3 = inlined_call_operand.vmem [shape: f32[1,128], index: 3, kind: input, shape index: {}]   ;;  %s955_s4 = inlined_call_operand.vmem [shape: bf16[128,32], index: 4, kind: input, shape index: {}]   ;;  %s956_s5 = inlined_call_operand.vmem [shape: f32[1,32], index: 5, kind: input, shape index: {}]   ;;  %s957_s6 = inlined_call_operand.hbm [shape: f32[2,8,32], index: 6, kind: output, shape index: {}]  }
   0x1   :  { %s11_s23 = sshll.u32 %s951_s0, 4  ;;  %s12_s23 = int_to_ptr.vmem [resolvable:$true] %s11_s23 }
   0x2   :  { %s665_s24 = scalar_lea.vmem %s12_s23, 32  ;;  %p670_p1 = scmp.lt.s32.totalorder %s12_s23, %s12_s23 }
   0x3   :  { %p666_p0 = scmp.ne.s32.totalorder %s12_s23, %s665_s24  ;;  %p671_p2 = scmp.lt.s32.totalorder %s665_s24, %s665_s24 }
   0x5   :  { %p672_p3 = por %p671_p2, %p670_p1 }
   0x7   :  { %p673_p4 = pnand %p672_p3, %p666_p0 }
   0x9   :  { %676 = shalt.err (!%p673_p4)  }
   0xa   :  { %s759_s25 = smov [#allocation3]  }
   0xb   :  { %14 = dma.vmem_to_smem %s12_s23, 32, %s759_s25, [#allocation2] }
   0xc   :  { %729 = dma.done.wait [#allocation2], 32 }
   0xd   :  { %730 = vsyncadd [#allocation2], 4294967264 }
   0xe   :  { %16 = sfence }
   0xf   :  { %17 = vsyncpa [#allocation5], 0 }
  0x10   :  { %19 = vsyncpa [#allocation5 + $0x1], 0  ;;  %s801_s26 = smov 0   ;;  %s803_s27 = smov 0  }
  0x11   :  { %s805_s0 = smov 0   ;;  %s807_s28 = smov 0  }
  0x12   :  { %s809_s29 = smov 0   ;;  %s811_s30 = smov 0  }
  0x13 LB: > { %s532_s7 = sadd.s32 4294967295, %s757_s30   ;;  %s533_s8 = sadd.s32 4294967294, %s757_s30   ;;  %s757_s30 = sphi %s811_s30, %s25_s30   ;;  %s753_s29 = sphi %s809_s29, %s964_s29   ;;  %s749_s28 = sphi %s807_s28, %s963_s28   ;;  %s745_s0 = sphi %s805_s0, %s962_s0   ;;  %s741_s27 = sphi %s803_s27, %s961_s27   ;;  %s737_s26 = sphi %s801_s26, %s960_s26  }
  0x14   : > { %s37_s9 = sadd.s32 1, %s753_s29  ;;  %s158_s10 = sadd.s32 1, %s745_s0 }
  0x15   : > { %p39_p5 = scmp.ge.s32.totalorder %s37_s9, 2  ;;  %p168_p6 = scmp.ne.s32.totalorder %s745_s0, %s741_s27 }
  0x16   : > { %p169_p7 = scmp.eq.s32.totalorder %s532_s7, 1  ;;  %p174_p8 = scmp.ne.s32.totalorder %s741_s27, %s737_s26 }
  0x17   : > { %s966_s9 = smov (%p39_p5, %s37_s9), 0  ;;  %p175_p10 = scmp.eq.s32.totalorder %s533_s8, 1 }
  0x18   : > { %p841_p9 = por %p169_p7, %p168_p6  ;;  %s153_s12 = ssub.s32 %s753_s29, %s966_s9 }
  0x19   : > { %p536_p11 = scmp.ge.s32.totalorder %s757_s30, 1  ;;  %p156_p12 = scmp.eq.s32.totalorder %s153_s12, 0 }
  0x1a   : > { %p848_p13 = por %p175_p10, %p174_p8  ;;  %p215_p0 = scmp.lt.s32.totalorder %s757_s30, 3 }
  0x1b   : > { %s854_s14 = scalar_select %p156_p12, %s745_s0, %s158_s10  }
  0x1c   : > { %p216_p1 = pnand %p536_p11, %p215_p0 }
  0x1d   : > { %v655_v0 = vld [vmem:[%s953_s2] sm:$0xff] (!%p216_p1)   ;;  %v760_v1 = vmov (!%p216_p1), 0.0   ;;  %v656_v2 = vld [vmem:[%s953_s2 + $0x8] sm:$0xff] (!%p216_p1)   ;;  %vm761_vm0 = vmmov (!%p216_p1), 0   ;;  %p245_p2 = scmp.lt.s32.totalorder (!%p216_p1), %s749_s28, 1  ;;  %vm283_vm1 = vcmask (!%p216_p1), 261120  }
  0x1e   : > { %219 = sbr.rel (%p216_p1) target bundleno = 494 (0x1ee), region = 40  ;;  %569 = vmatprep.subr.bf16.mxu0 (!%p216_p1), %v760_v1  ;;  %577 = vmatprep.subr.bf16.mxu1 (!%p216_p1), %v760_v1  ;;  %v657_v3 = vld [vmem:[%s955_s4] sm:$0xff] (!%p216_p1)   ;;  %v658_v4 = vld [vmem:[%s955_s4 + $0x8] sm:$0xff] (!%p216_p1)   ;;  %v659_v6 = vld [vmem:[%s955_s4 + $0x10] sm:$0xff] (!%p216_p1)   ;;  %s242_s16 = sand.u32 (!%p216_p1), 1, %s741_s27  }
  0x1f   : > { %570 = vmatpush3.bf16.msra.mxu0 (!%p216_p1), %v655_v0  ;;  %573 = vmatprep.mubr.msk.bf16.mxu0 (!%p216_p1), %vm761_vm0, %v760_v1  ;;  %v660_v8 = vld [vmem:[%s955_s4 + $0x18] sm:$0xff] (!%p216_p1)   ;;  %v661_v9 = vld [vmem:[%s955_s4 + $0x20] sm:$0xff] (!%p216_p1)   ;;  %v662_v10 = vld [vmem:[%s955_s4 + $0x28] sm:$0xff] (!%p216_p1)   ;;  %s537_s18 = sshll.u32 (!%p216_p1), %s242_s16, 3  ;;  %s447_s25 = scalar_lea.sflag (!%p216_p1), [#allocation5], %s242_s16 }
  0x20   : > { %571 = vmatprep.subr.bf16.mxu0 (!%p216_p1), %v760_v1  ;;  %593 = vmatprep.mubr.msk.bf16.mxu1 (!%p216_p1), %vm761_vm0, %v760_v1  ;;  %v663_v11 = vld [vmem:[%s955_s4 + $0x30] sm:$0xff] (!%p216_p1)   ;;  %v664_v12 = vld [vmem:[%s955_s4 + $0x38] sm:$0xff] (!%p216_p1)   ;;  %v540_v13 = vld [vmem:[%s954_s3] ss:$0 sm:$0xff] (!%p216_p1) }
  0x21   : > { %578 = vmatpush3.bf16.msra.mxu1 (!%p216_p1), %v657_v3  ;;  %v544_v21 = vld [vmem:[%s956_s5] ss:$0 sm:$0xff] (!%p216_p1) }
  0x22   : > { %579 = vmatprep.subr.bf16.mxu1 (!%p216_p1), %v760_v1 }
  0x23   : > { %572 = vmatpush3.bf16.msra.mxu0 (!%p216_p1), %v656_v2 }
  0x25   : > { %s246_s21 = scalar_select %p245_p2, %s749_s28, 1  ;;  %580 = vmatpush3.bf16.msra.mxu1 %v658_v4 }
  0x26   : > { %581 = vmatprep.subr.bf16.mxu1 %v760_v1 }
  0x27   : > { %s538_s24 = sshll.u32 %s246_s21, 3  ;;  %s244_s21 = scalar_lea.vmem [#allocation4], %s537_s18 }
  0x28   : > { %s251_s8 = scalar_lea.vmem %s952_s1, %s538_s24 }
  0x29   : > { %v258_v5 = vld [vmem:[%s251_s8] sm:$0xff]  ;;  %582 = vmatpush3.bf16.msra.mxu1 %v659_v6  ;;  %s539_s8 = sshll.u32 %s749_s28, 7  ;;  %s461_s28 = sshll.u32 %s244_s21, 4  ;;  %s905_s28 = int_to_ptr.vmem [resolvable:$true] %s461_s28 }
  0x2a   : > { %v259_v7 = vpack.c.bf16 %v258_v5, %v258_v5  ;;  %583 = vmatprep.subr.bf16.mxu1 %v760_v1  ;;  %s255_s10 = sadd.s32 1, %s539_s8  ;;  %s254_s12 = sld [smem:[#allocation3 + %s539_s8]] }
  0x2b   : > { %s256_s15 = sld [smem:[#allocation3 + %s255_s10]]  ;;  %s903_s24 = scalar_lea.hbm %s957_s6, %s539_s8 }
  0x2c   : > { %574 = vmatmul.mubr.msk.bf16.vlgmr.msra.gmra.mrb[0].mxu0 %vm283_vm1, %v259_v7  ;;  %s677_s7 = scalar_lea.vmem %s905_s28, 128  ;;  %s762_s10 = smov [#allocation4]  }
  0x2d   : > { %584 = vmatpush3.bf16.msra.mxu1 %v660_v8  ;;  %p678_p3 = scmp.ne.s32.totalorder %s905_s28, %s677_s7 }
  0x2e   : > { %585 = vmatprep.subr.bf16.mxu1 %v760_v1 }
  0x2f   : > { %p679_p4 = pnand %p678_p3, %p841_p9 }
  0x30   : > { %v440_v24 = vstv %s254_s12 }
  0x31   : > { %586 = vmatpush3.bf16.msra.mxu1 %v661_v9  ;;  %s257_s17 = sadd.f32 %s256_s15, %s254_s12  ;;  %p680_p5 = pneg %p679_p4 }
  0x32   : > { %587 = vmatprep.subr.bf16.mxu1 %v760_v1  ;;  %s681_s12 = sshll.u32 %s762_s10, 4  ;;  %s682_s12 = int_to_ptr.vmem [resolvable:$false] %s681_s12 }
  0x33   : > { %v442_v22 = vstv %s257_s17  ;;  %s683_s15 = scalar_lea.vmem %s682_s12, 256  ;;  %p684_p6 = scmp.lt.s32.totalorder %s905_s28, %s682_s12 }
  0x34   : > { %v443_v26 = vmul.f32 %v442_v22, %v258_v5  ;;  %p685_p7 = scmp.lt.s32.totalorder %s683_s15, %s677_s7 }
  0x35   : > { %588 = vmatpush3.bf16.msra.mxu1 %v662_v10 }
  0x36   : > { %589 = vmatprep.subr.bf16.mxu1 %v760_v1  ;;  %p686_p8 = por %p685_p7, %p684_p6 }
  0x38   : > { %p687_p10 = pnand %p686_p8, %p680_p5 }
  0x39   : > { %590 = vmatpush3.bf16.msra.mxu1 %v663_v11 }
  0x3a   : > { %591 = vmatprep.subr.bf16.mxu1 %v760_v1 }
  0x3d   : > { %592 = vmatpush3.bf16.msra.mxu1 %v664_v12 }
  0xff   : > { %v321_v14 = vpop.f32.mrb[0].mxu0 }
 0x100   : > { %v322_v15 = vadd.f32 %v540_v13, %v321_v14  ;;  %v575_v16 = vpop.f32.mrb[1].mxu0 }
 0x101   : > { %v324_v17 = vpop.f32.mrb[2].mxu0 }
 0x102   : > { %v327_v18 = vmax.f32 %v322_v15, 0.0  ;;  %v576_v19 = vpop.f32.mrb[3].mxu0 }
 0x104   : > { %v328_v20 = vpack.c.bf16 %v327_v18, %v327_v18 }
 0x106   : > { %594 = vmatmul.mubr.bf16.vlgmr.msra.gmra.mrb[0].mxu1 %v328_v20 }
 0x1d9   : > { %v434_v23 = vpop.f32.mrb[0].mxu1 }
 0x1da   : > { %v435_v25 = vadd.f32 %v544_v21, %v434_v23  ;;  %v595_v27 = vpop.f32.mrb[1].mxu1 }
 0x1db   : > { %v437_v28 = vpop.f32.mrb[2].mxu1 }
 0x1dc   : > { %v441_v29 = vmul.f32 %v440_v24, %v435_v25  ;;  %v596_v30 = vpop.f32.mrb[3].mxu1 }
 0x1de   : > { %v444_v31 = vadd.f32 %v443_v26, %v441_v29 }
 0x1e0   : > { %445 = vst.msk [vmem:[%s244_s21] sm:$0xff] %vm283_vm1, %v444_v31 }
 0x1e1   : > { %690 = shalt.err (!%p687_p10)
}
 0x1e2   : > { %s691_s8 = scalar_lea.hbm %s903_s24, 128  ;;  %s695_s18 = scalar_lea.hbm %s957_s6, 256 }
 0x1e3   : > { %p692_p11 = scmp.ne.s32.totalorder %s903_s24, %s691_s8  ;;  %p696_p1 = scmp.lt.u32.totalorder %s903_s24, %s957_s6 }
 0x1e4   : > { %p697_p2 = scmp.lt.u32.totalorder %s695_s18, %s691_s8  ;;  %p699_p4 = scmp.lt.u32.totalorder %s691_s8, %s903_s24 }
 0x1e5   : > { %p693_p12 = pnand %p692_p11, %p841_p9 }
 0x1e6   : > { %p698_p3 = por %p697_p2, %p696_p1 }
 0x1e7   : > { %p694_p0 = pneg %p693_p12 }
 0x1e8   : > { %p700_p5 = por %p699_p4, %p698_p3 }
 0x1ea   : > { %p701_p6 = pnand %p700_p5, %p694_p0 }
 0x1ec   : > { %704 = shalt.err (!%p701_p6)
}
 0x1ed   : > { %597 = dma.vmem_to_hbm [thread:$0]  (%p841_p9), %s905_s28, 128, %s903_s24, %s447_s25  }
 0x1ee PF: > { %p603_p7 = scmp.ge.s32.totalorder %s757_s30, 2  ;;  %s473_s21 = sand.u32 1, %s737_s26  }
 0x1ef   : > { %s474_s22 = scalar_lea.sflag [#allocation5], %s473_s21 }
 0x1f0   : > { %p600_p8 = pnand %p603_p7, %p848_p13 }
 0x1f2   : > { %732 = dma.done.wait (!%p600_p8), %s474_s22, 128  }
 0x1f3   : > { %734 = vsyncadd (!%p600_p8), %s474_s22, 4294967168  ;;  %s25_s30 = sadd.s32 1, %s757_s30   ;;  %s960_s26 = smov %s741_s27 }
 0x1f4   : > { %p22_p10 = scmp.ge.s32.totalorder %s25_s30, 4   ;;  %s961_s27 = smov %s745_s0 }
 0x1f5   : > { %s962_s0 = smov %s854_s14  ;;  %s963_s28 = smov %s753_s29 }
 0x1f6   : > { %s964_s29 = smov %s966_s9  ;;  %24 = sbr.rel (!%p22_p10) target bundleno = 19 (0x13), region = 75 }
 0x1fd   :  { %479 = vsyncpa [#allocation5], 1 }
 0x1fe   :  { %481 = vsyncpa [#allocation5 + $0x1], 1 }

</bundles_post_ra>
